<compile_context>
chip_gen: v5e
topology: v5e:2x2
jax: 0.10.0
libtpu: 0.0.40
codegen_flags: <defaults>
</compile_context>

<pallas_src>
import jax
import jax.numpy as jnp
from jax import lax
from jax.experimental import pallas as pl
from jax.experimental.pallas import tpu as pltpu

# ------------------------- small, self-consistent config -------------------------
# (The original PyTorch module hard-codes fc in_features=14256 for its own configs;
#  here the Linear input width is SENT_FEAT + LEX_FEAT so it matches the downscaled
#  concatenated feature width.)
VOCAB_SIZE   = 50
EMB_DIM      = 16       # embedding_dimension
POS_EMB_DIM  = 8        # pos_embedding_dimension
OUT_DIM      = 32       # out_dimension (conv out channels)
MAX_LEN      = 16       # max_sentence_length
ENT_LEN      = 2        # tokens per entity
LABEL_NUM    = 4
KERNEL_SIZES = (2, 3, 4, 5)
K_MAX        = max(KERNEL_SIZES)
PAD          = max(k // 2 for k in KERNEL_SIZES)           # common pad buffer = 2
C_IN         = EMB_DIM + 2 * POS_EMB_DIM                   # 32 conv in channels
SENT_FEAT    = len(KERNEL_SIZES) * OUT_DIM                  # 128 (lane-dense)
LEX_FEAT     = 2 * ENT_LEN * EMB_DIM                        # 64
FC_PAD       = 128                                          # lane-dense padded label width
B            = 2

# TODO(synk): nn.Dropout is called but its result is discarded in the PyTorch forward
# (and is identity in eval) -> intentionally omitted.


# --------------------------------- Pallas kernel ----------------------------------
def textcnn_kernel(xim_ref, lex_ref, wconv_ref, bconv_ref,
                   fcw_s_ref, fcw_l_ref, fcb_ref, out_ref):
    # xim_ref:   (B*MAX_LEN, K_MAX*C_IN) bf16  im2col sentence features
    # lex_ref:   (B, LEX_FEAT)           bf16  lexical (entity) features
    # wconv_ref: (K_MAX*C_IN, SENT_FEAT) bf16  fused, zero-padded conv weight (all 4 branches)
    # bconv_ref: (1, SENT_FEAT)          f32   fused conv bias
    # fcw_s_ref: (SENT_FEAT, FC_PAD)     bf16  fc weight, sentence block, label dim 0-padded
    # fcw_l_ref: (LEX_FEAT, FC_PAD)      bf16  fc weight, lexical block,  label dim 0-padded
    # fcb_ref:   (1, FC_PAD)             f32   fc bias, label dim 0-padded
    conv = jnp.dot(xim_ref[...], wconv_ref[...],
                   preferred_element_type=jnp.float32)            # one MXU push, (B*L, 128)
    act = jnp.tanh(conv + bconv_ref[...])                          # f32 bias (VPU) + tanh (EUP)
    sent = jnp.max(act.reshape(B, MAX_LEN, SENT_FEAT), axis=1)     # MaxPool1d(max_len), XLU
    # Final Linear: two small MXU pushes instead of lane-concat + one matmul.
    out = jnp.dot(sent.astype(jnp.bfloat16), fcw_s_ref[...],
                  preferred_element_type=jnp.float32)
    out = out + jnp.dot(lex_ref[...], fcw_l_ref[...],
                        preferred_element_type=jnp.float32)
    out_ref[...] = (out + fcb_ref[...]).astype(out_ref.dtype)      # unmasked lane-dense store


_N_IN = 7
_textcnn_call = pl.pallas_call(
    textcnn_kernel,
    out_shape=jax.ShapeDtypeStruct((B, FC_PAD), jnp.float32),
    in_specs=[pl.BlockSpec(memory_space=pltpu.MemorySpace.VMEM)] * _N_IN,
    out_specs=pl.BlockSpec(memory_space=pltpu.MemorySpace.VMEM),
)


# --------------------- one-time parameter packing (outside the step) ---------------------
def pack_params(params):
    """Re-layout & fuse weights once: zero-padded im2col conv weight, fused bias,
    split + lane-padded fc weights."""
    w_fused = jnp.zeros((K_MAX * C_IN, SENT_FEAT), jnp.float32)
    for i, (k, w) in enumerate(zip(KERNEL_SIZES, params["conv_w"])):   # w: (OUT_DIM, C_IN, k)
        off = PAD - k // 2                       # aligns with PyTorch padding=k//2
        for j in range(k):
            t = off + j                          # tap index in the K_MAX im2col window
            w_fused = w_fused.at[t * C_IN:(t + 1) * C_IN,
                                 i * OUT_DIM:(i + 1) * OUT_DIM].set(w[:, :, j].T)
    b_fused = jnp.concatenate(params["conv_b"]).reshape(1, SENT_FEAT)

    fc_w = params["fc_w"]                        # (LABEL_NUM, SENT_FEAT + LEX_FEAT)
    fcw_s = jnp.zeros((SENT_FEAT, FC_PAD), jnp.float32)
    fcw_s = fcw_s.at[:, :LABEL_NUM].set(fc_w[:, :SENT_FEAT].T)
    fcw_l = jnp.zeros((LEX_FEAT, FC_PAD), jnp.float32)
    fcw_l = fcw_l.at[:, :LABEL_NUM].set(fc_w[:, SENT_FEAT:].T)
    fcb = jnp.zeros((1, FC_PAD), jnp.float32)
    fcb = fcb.at[:, :LABEL_NUM].set(params["fc_b"].reshape(1, LABEL_NUM))

    return (w_fused.astype(jnp.bfloat16), b_fused.astype(jnp.float32),
            fcw_s.astype(jnp.bfloat16), fcw_l.astype(jnp.bfloat16),
            fcb.astype(jnp.float32))


# ------------------------------- jitted forward step -------------------------------
@jax.jit
def textcnn_forward(sentences, entity1, entity2, pos1, pos2,
                    embed, embed_pos, w_fused, b_fused, fcw_s, fcw_l, fcb):
    # embedding gathers + feature concat + im2col: plain-JAX glue fused with the pallas_call
    s  = embed[sentences]                               # (B, L, EMB_DIM)
    e1 = embed[entity1]                                 # (B, ENT_LEN, EMB_DIM)
    e2 = embed[entity2]
    p1 = embed_pos[pos1]                                # (B, L, POS_EMB_DIM)
    p2 = embed_pos[pos2]
    lex = jnp.concatenate([e1, e2], axis=1).reshape(B, LEX_FEAT)
    x = jnp.concatenate([s, p1, p2], axis=2)            # (B, L, C_IN)
    xpad = jnp.pad(x, ((0, 0), (PAD, PAD), (0, 0)))     # (B, L+2*PAD, C_IN)
    # im2col: tap t covers sentence offset (t - PAD); zero-padded weight selects taps per branch
    xim = jnp.concatenate([xpad[:, t:t + MAX_LEN, :] for t in range(K_MAX)], axis=-1)
    xim = xim.reshape(B * MAX_LEN, K_MAX * C_IN)        # (32, 160)
    out_pad = _textcnn_call(xim.astype(jnp.bfloat16), lex.astype(jnp.bfloat16),
                            w_fused, b_fused, fcw_s, fcw_l, fcb)   # (B, 128) lane-dense
    return out_pad[:, :LABEL_NUM]                        # real logits


# -------------------------------- plain-JAX reference --------------------------------
def reference_forward(sentences, entity1, entity2, pos1, pos2, params):
    emb, pos_emb = params["embed"], params["embed_pos"]
    s  = emb[sentences]
    e1 = emb[entity1]
    e2 = emb[entity2]
    p1 = pos_emb[pos1]
    p2 = pos_emb[pos2]
    lex = jnp.concatenate([e1, e2], axis=1).reshape(B, -1)
    x = jnp.concatenate([s, p1, p2], axis=2)                  # (B, L, C_IN)
    x_ncl = jnp.transpose(x, (0, 2, 1))                       # NCL like PyTorch
    feats = []
    for ksize, w, bias in zip(KERNEL_SIZES, params["conv_w"], params["conv_b"]):
        p = ksize // 2
        y = lax.conv_general_dilated(x_ncl, w, window_strides=(1,), padding=[(p, p)],
                                     dimension_numbers=("NCH", "OIH", "NCH"))
        y = jnp.tanh(y + bias[None, :, None])
        feats.append(jnp.max(y[:, :, :MAX_LEN], axis=2))      # MaxPool1d(max_len)
    sent = jnp.concatenate(feats, axis=1)
    all_concat = jnp.concatenate([sent, lex], axis=1)
    return all_concat @ params["fc_w"].T + params["fc_b"]


# --------------------------------------- main ---------------------------------------
if __name__ == "__main__":
    key = jax.random.PRNGKey(0)
    ks = jax.random.split(key, 16)

    # deterministic synthetic parameters (no checkpoint)
    params = {
        "embed":     jax.random.normal(ks[0], (VOCAB_SIZE, EMB_DIM), jnp.float32) * 0.1,
        "embed_pos": jax.random.normal(ks[1], (300, POS_EMB_DIM), jnp.float32) * 0.1,
        "conv_w": [jax.random.normal(ks[2 + i], (OUT_DIM, C_IN, k), jnp.float32) * 0.05
                   for i, k in enumerate(KERNEL_SIZES)],
        "conv_b": [jax.random.normal(ks[6 + i], (OUT_DIM,), jnp.float32) * 0.05
                   for i in range(len(KERNEL_SIZES))],
        "fc_w": jax.random.normal(ks[10], (LABEL_NUM, SENT_FEAT + LEX_FEAT), jnp.float32) * 0.05,
        "fc_b": jax.random.normal(ks[11], (LABEL_NUM,), jnp.float32) * 0.05,
    }

    # deterministic example inputs (token / position ids)
    sentences = jax.random.randint(ks[12], (B, MAX_LEN), 0, VOCAB_SIZE, jnp.int32)
    entity1   = jax.random.randint(ks[13], (B, ENT_LEN), 0, VOCAB_SIZE, jnp.int32)
    entity2   = jax.random.randint(ks[14], (B, ENT_LEN), 0, VOCAB_SIZE, jnp.int32)
    pos1      = jax.random.randint(ks[15], (B, MAX_LEN), 0, 300, jnp.int32)
    pos2      = jax.random.randint(ks[15], (B, MAX_LEN), 5, 300, jnp.int32)

    # pack / re-layout weights once (hoisted out of the step function)
    w_fused, b_fused, fcw_s, fcw_l, fcb = pack_params(params)

    out = textcnn_forward(sentences, entity1, entity2, pos1, pos2,
                          params["embed"], params["embed_pos"],
                          w_fused, b_fused, fcw_s, fcw_l, fcb)
    out = jax.block_until_ready(out)

    ref = reference_forward(sentences, entity1, entity2, pos1, pos2, params)
    assert out.shape == (B, LABEL_NUM)
    # kernel uses bf16 MXU operands (f32 accumulation); compare against the f32 reference
    # with a correspondingly relaxed tolerance.
    assert jnp.allclose(out, ref, atol=2e-2, rtol=2e-2), (out, ref)
    print("KERNEL_OK")
</pallas_src>

<mosaic_0001>
module attributes {stable_mosaic.version = 11 : i64} {
  func.func @textcnn_kernel(%arg0: memref<32x160xbf16, #tpu.memory_space<vmem>>, %arg1: memref<2x64xbf16, #tpu.memory_space<vmem>>, %arg2: memref<160x128xbf16, #tpu.memory_space<vmem>>, %arg3: memref<1x128xf32, #tpu.memory_space<vmem>>, %arg4: memref<128x128xbf16, #tpu.memory_space<vmem>>, %arg5: memref<64x128xbf16, #tpu.memory_space<vmem>>, %arg6: memref<1x128xf32, #tpu.memory_space<vmem>>, %arg7: memref<2x128xf32, #tpu.memory_space<vmem>>) attributes {dimension_semantics = [], scalar_prefetch = 0 : i64, scratch_operands = 0 : i64, tpu.core_type = #tpu.core_type<tc>} {
    %c0 = arith.constant 0 : index
    %c0_0 = arith.constant 0 : index
    %0 = vector.load %arg0[%c0, %c0_0] : memref<32x160xbf16, #tpu.memory_space<vmem>>, vector<32x160xbf16>
    %c0_1 = arith.constant 0 : index
    %c0_2 = arith.constant 0 : index
    %1 = vector.load %arg2[%c0_1, %c0_2] : memref<160x128xbf16, #tpu.memory_space<vmem>>, vector<160x128xbf16>
    %cst = arith.constant dense<0.000000e+00> : vector<32x128xf32>
    %2 = tpu.matmul %0, %1, %cst {dimension_numbers = #tpu.dot_dimension_numbers<[1], [0], [0], [1], [0, 0, 1, 1], [], []>} : vector<32x160xbf16>, vector<160x128xbf16>, vector<32x128xf32> -> vector<32x128xf32>
    %c0_3 = arith.constant 0 : index
    %c0_4 = arith.constant 0 : index
    %3 = vector.load %arg3[%c0_3, %c0_4] : memref<1x128xf32, #tpu.memory_space<vmem>>, vector<1x128xf32>
    %4 = vector.broadcast %3 : vector<1x128xf32> to vector<32x128xf32>
    %5 = arith.addf %2, %4 : vector<32x128xf32>
    %6 = math.tanh %5 : vector<32x128xf32>
    %7 = vector.shape_cast %6 : vector<32x128xf32> to vector<2x16x128xf32>
    %cst_5 = arith.constant dense<0xFF800000> : vector<2x128xf32>
    %8 = vector.multi_reduction <maximumf>, %7, %cst_5 [1] : vector<2x16x128xf32> to vector<2x128xf32>
    %9 = arith.truncf %8 : vector<2x128xf32> to vector<2x128xbf16>
    %c0_6 = arith.constant 0 : index
    %c0_7 = arith.constant 0 : index
    %10 = vector.load %arg4[%c0_6, %c0_7] : memref<128x128xbf16, #tpu.memory_space<vmem>>, vector<128x128xbf16>
    %cst_8 = arith.constant dense<0.000000e+00> : vector<2x128xf32>
    %11 = tpu.matmul %9, %10, %cst_8 {dimension_numbers = #tpu.dot_dimension_numbers<[1], [0], [0], [1], [0, 0, 1, 1], [], []>} : vector<2x128xbf16>, vector<128x128xbf16>, vector<2x128xf32> -> vector<2x128xf32>
    %c0_9 = arith.constant 0 : index
    %c0_10 = arith.constant 0 : index
    %12 = vector.load %arg1[%c0_9, %c0_10] : memref<2x64xbf16, #tpu.memory_space<vmem>>, vector<2x64xbf16>
    %c0_11 = arith.constant 0 : index
    %c0_12 = arith.constant 0 : index
    %13 = vector.load %arg5[%c0_11, %c0_12] : memref<64x128xbf16, #tpu.memory_space<vmem>>, vector<64x128xbf16>
    %cst_13 = arith.constant dense<0.000000e+00> : vector<2x128xf32>
    %14 = tpu.matmul %12, %13, %cst_13 {dimension_numbers = #tpu.dot_dimension_numbers<[1], [0], [0], [1], [0, 0, 1, 1], [], []>} : vector<2x64xbf16>, vector<64x128xbf16>, vector<2x128xf32> -> vector<2x128xf32>
    %15 = arith.addf %11, %14 : vector<2x128xf32>
    %c0_14 = arith.constant 0 : index
    %c0_15 = arith.constant 0 : index
    %16 = vector.load %arg6[%c0_14, %c0_15] : memref<1x128xf32, #tpu.memory_space<vmem>>, vector<1x128xf32>
    %17 = vector.broadcast %16 : vector<1x128xf32> to vector<2x128xf32>
    %18 = arith.addf %15, %17 : vector<2x128xf32>
    %c0_16 = arith.constant 0 : index
    %c0_17 = arith.constant 0 : index
    %19 = vector.load %arg7[%c0_16, %c0_17] : memref<2x128xf32, #tpu.memory_space<vmem>>, vector<2x128xf32>
    tpu.vector_store %arg7[%c0_16, %c0_17], %18 {strides = array<i32>} : memref<2x128xf32, #tpu.memory_space<vmem>>, vector<2x128xf32>,
    return
  }
}

</mosaic_0001>

<bundles_post_ra>
// kernel: textcnn_forward.1
= control target key start
LH: loop header
LB: loop body
LE: loop exit
PB: predicated region body
PF: predicated region fallthrough
CT: control target
= control target key end

     0   :  { %s671_s0 = inlined_call_operand.vmem [shape: bf16[32,160], index: 0, kind: input, shape index: {}]   ;;  %s672_s1 = inlined_call_operand.vmem [shape: bf16[2,64], index: 1, kind: input, shape index: {}]   ;;  %s673_s2 = inlined_call_operand.vmem [shape: bf16[160,128], index: 2, kind: input, shape index: {}]   ;;  %s674_s3 = inlined_call_operand.vmem [shape: f32[1,128], index: 3, kind: input, shape index: {}]   ;;  %s675_s4 = inlined_call_operand.vmem [shape: bf16[128,128], index: 4, kind: input, shape index: {}]   ;;  %s676_s5 = inlined_call_operand.vmem [shape: bf16[64,128], index: 5, kind: input, shape index: {}]   ;;  %s677_s6 = inlined_call_operand.vmem [shape: f32[1,128], index: 6, kind: input, shape index: {}]   ;;  %s678_s7 = inlined_call_operand.hbm [shape: f32[2,128], index: 7, kind: output, shape index: {}]  }
   0x1   :  { %v474_v0 = vld [vmem:[%s673_s2 + $0x38] sm:$0xff]  ;;  %v476_v1 = vld [vmem:[%s673_s2 + $0x48] sm:$0xff]  ;;  %v473_v2 = vld [vmem:[%s673_s2 + $0x30] sm:$0xff] }
   0x2   :  { %141 = vmatpush.bf16.msra.mxu0 %v474_v0  ;;  %166 = vmatpush.bf16.msra.mxu1 %v476_v1  ;;  %v475_v3 = vld [vmem:[%s673_s2 + $0x40] sm:$0xff]  ;;  %v360_v5 = vld [vmem:[%s671_s0 + $0x8] sm:$0xf0] }
   0x3   :  { %v463_v4 = vld [vmem:[%s671_s0 + $0x4] sm:$0xf]  ;;  %v472_v6 = vld [vmem:[%s673_s2 + $0x28] sm:$0xff] }
   0x4   :  { %v363_v7 = vor.u32 %v463_v4, %v360_v5 }
   0x6   :  { %142 = vmatpush.bf16.msra.mxu0 %v473_v2 }
   0x7   :  { %12 = vsyncpa [#allocation3], 0  ;;  %167 = vmatpush.bf16.msra.mxu1 %v475_v3  ;;  %vm134_vm0 = vcmask 261120   ;;  %v471_v8 = vld [vmem:[%s673_s2 + $0x20] sm:$0xff]  ;;  %v470_v9 = vld [vmem:[%s673_s2 + $0x18] sm:$0xff]  ;;  %vm248_vm1 = vcmask 523264  }
   0x8   :  { %v469_v10 = vld [vmem:[%s673_s2 + $0x10] sm:$0xff]  ;;  %v368_v12 = vld [vmem:[%s671_s0 + $0x18] sm:$0xf0]  ;;  %v468_v13 = vld [vmem:[%s673_s2 + $0x8] sm:$0xff]  ;;  %vm269_vm2 = vcmask 1041409   ;;  %s526_s14 = smov [#allocation2]  }
   0x9   :  { %v465_v11 = vld [vmem:[%s671_s0 + $0x14] sm:$0xf]  ;;  %v467_v15 = vld [vmem:[%s673_s2] sm:$0xff]  ;;  %v464_v17 = vld [vmem:[%s671_s0 + $0x4] sm:$0xf0]  ;;  %s345_s15 = sshll.u32 %s526_s14, 4  ;;  %s346_s15 = int_to_ptr.vmem [resolvable:$true] %s345_s15 }
   0xa   :  { %143 = vmatpush.bf16.msra.mxu0 %v472_v6  ;;  %412 = vmatmul.msk.bf16.vlgmr.msra.gmra.mxu1 %vm134_vm0, %v363_v7  ;;  %v371_v14 = vor.u32 %v465_v11, %v368_v12  ;;  %v358_v16 = vld [vmem:[%s671_s0] sm:$0xf]  ;;  %v366_v19 = vld [vmem:[%s671_s0 + $0x10] sm:$0xf]  ;;  %v466_v20 = vld [vmem:[%s671_s0 + $0x14] sm:$0xf0] }
   0xb   :  { %v359_v18 = vor.u32 %v464_v17, %v358_v16  ;;  %v367_v21 = vor.u32 %v466_v20, %v366_v19  ;;  %v484_v22 = vld [vmem:[%s675_s4 + $0x38] sm:$0xff]  ;;  %v483_v24 = vld [vmem:[%s675_s4 + $0x30] sm:$0xff]  ;;  %v490_v25 = vld [vmem:[%s674_s3] ss:$0 sm:$0xff]  ;;  %s347_s18 = sshll.u32 %s678_s7, 4  ;;  %s348_s18 = int_to_ptr.hbm [resolvable:$true] %s347_s18 }
   0xc   :  { %321 = vmatpush.bf16.msra.mxu3 %v484_v22  ;;  %v488_v27 = vld [vmem:[%s676_s5 + $0x18] sm:$0xff]  ;;  %v482_v28 = vld [vmem:[%s675_s4 + $0x28] sm:$0xff]  ;;  %v487_v30 = vld [vmem:[%s676_s5 + $0x10] sm:$0xff] }
   0xd   :  { %256 = vmatpush.bf16.msra.mxu2 %v488_v27  ;;  %v481_v31 = vld [vmem:[%s675_s4 + $0x20] sm:$0xff]  ;;  %v486_v33 = vld [vmem:[%s676_s5 + $0x8] sm:$0xff]  ;;  %v480_v34 = vld [vmem:[%s675_s4 + $0x18] sm:$0xff] }
   0xe   :  { %144 = vmatpush.bf16.msra.mxu0 %v471_v8  ;;  %v485_v38 = vld [vmem:[%s676_s5] sm:$0xff]  ;;  %v479_v39 = vld [vmem:[%s675_s4 + $0x10] sm:$0xff]  ;;  %v478_v42 = vld [vmem:[%s675_s4 + $0x8] sm:$0xff] }
   0xf   :  { %v215_v41 = vld [vmem:[%s672_s1] sm:$0x1] }
  0x10   :  { %322 = vmatpush.bf16.msra.mxu3 %v483_v24  ;;  %v477_v46 = vld [vmem:[%s675_s4] sm:$0xff] }
  0x11   :  { %257 = vmatpush.bf16.msra.mxu2 %v487_v30 }
  0x12   :  { %145 = vmatpush.bf16.msra.mxu0 %v470_v9 }
  0x14   :  { %323 = vmatpush.bf16.msra.mxu3 %v482_v28 }
  0x15   :  { %258 = vmatpush.bf16.msra.mxu2 %v486_v33 }
  0x16   :  { %146 = vmatpush.bf16.msra.mxu0 %v469_v10 }
  0x18   :  { %324 = vmatpush.bf16.msra.mxu3 %v481_v31 }
  0x19   :  { %259 = vmatpush.bf16.msra.mxu2 %v485_v38 }
  0x1a   :  { %147 = vmatpush.bf16.msra.mxu0 %v468_v13  ;;  %413 = vmatmul.msk.bf16.gmra.mxu1 %vm134_vm0, %v371_v14  ;;  %v491_v14 = vld [vmem:[%s677_s6] ss:$0 sm:$0xff] }
  0x1c   :  { %325 = vmatpush.bf16.msra.mxu3 %v480_v34  ;;  %430 = vmatmul.msk.bf16.vlgmr.msra.gmra.mxu2 %vm248_vm1, %v215_v41 }
  0x1e   :  { %148 = vmatpush.bf16.msra.mxu0 %v467_v15 }
  0x20   :  { %326 = vmatpush.bf16.msra.mxu3 %v479_v39 }
  0x21   :  { %149 = vmatmul.bf16.vlgmr.msra.gmra.mxu0 %v359_v18 }
  0x24   :  { %327 = vmatpush.bf16.msra.mxu3 %v478_v42 }
  0x28   :  { %328 = vmatpush.bf16.msra.mxu3 %v477_v46 }
  0x31   :  { %154 = vmatmul.bf16.gmra.mxu0 %v367_v21 }
  0x87   :  { %v169_v23 = vpop.f32.mrf.mxu1 }
  0x8f   :  { %v171_v32 = vpop.f32.mrf.mxu1 }
  0x97   :  { %v174_v43 = vpop.f32.mrf.mxu1 }
  0x9e   :  { %v150_v26 = vpop.f32.mrf.mxu0 }
  0x9f   :  { %v151_v29 = vadd.f32 %v490_v25, %v150_v26  ;;  %v176_v54 = vpop.f32.mrf.mxu1  ;;  %v261_v12 = vpop.f32.mrf.mxu2 }
  0xa1   :  { %v170_v35 = vadd.f32 %v169_v23, %v151_v29 }
  0xa3   :  { %492 = vtanh.f32 %v170_v35 }
  0xa6   :  { %v152_v36 = vpop.f32.mrf.mxu0 }
  0xa7   :  { %v153_v37 = vadd.f32 %v490_v25, %v152_v36  ;;  %v263_v13 = vpop.f32.mrf.mxu2 }
  0xa9   :  { %v172_v40 = vadd.f32 %v171_v32, %v153_v37  ;;  %v493_v45 = vpop.eup %492 }
  0xab   :  { %494 = vtanh.f32 %v172_v40 }
  0xae   :  { %v155_v44 = vpop.f32.mrf.mxu0 }
  0xaf   :  { %v156_v49 = vadd.f32 %v490_v25, %v155_v44 }
  0xb1   :  { %v495_v47 = vpop.eup %494  ;;  %v175_v51 = vadd.f32 %v174_v43, %v156_v49 }
  0xb2   :  { %v183_v48 = vmax.f32 %v493_v45, %v495_v47 }
  0xb3   :  { %496 = vtanh.f32 %v175_v51 }
  0xb4   :  { %v184_v50 = vrot.slane %v183_v48, 4 }
  0xb6   :  { %v157_v52 = vpop.f32.mrf.mxu0  ;;  %v185_v56 = vmax.f32 %v183_v48, %v184_v50 }
  0xb7   :  { %v158_v53 = vadd.f32 %v490_v25, %v157_v52 }
  0xb8   :  { %v186_v57 = vrot.slane %v185_v56, 2 }
  0xb9   :  { %v177_v55 = vadd.f32 %v176_v54, %v158_v53  ;;  %v497_v58 = vpop.eup %496 }
  0xba   :  { %v187_v61 = vmax.f32 %v185_v56, %v186_v57 }
  0xbb   :  { %498 = vtanh.f32 %v177_v55 }
  0xbc   :  { %v188_v63 = vrot.slane %v187_v61, 1 }
  0xbe   :  { %v189_v2 = vmax.f32 %v187_v61, %v188_v63 }
  0xc0   :  { %v197_v6 = vpack.c.bf16 %v189_v2, %v189_v2 }
  0xc1   :  { %v499_v59 = vpop.eup %498 }
  0xc2   :  { %v190_v60 = vmax.f32 %v497_v58, %v499_v59  ;;  %v267_v8 = vunpack.c.l.b16 %v197_v6 }
  0xc4   :  { %v191_v62 = vrot.slane %v190_v60, 4 }
  0xc6   :  { %v192_v0 = vmax.f32 %v190_v60, %v191_v62 }
  0xc8   :  { %v193_v1 = vrot.slane %v192_v0, 2 }
  0xca   :  { %v194_v3 = vmax.f32 %v192_v0, %v193_v1 }
  0xcc   :  { %v195_v4 = vrot.slane %v194_v3, 1 }
  0xce   :  { %v196_v5 = vmax.f32 %v194_v3, %v195_v4 }
  0xd0   :  { %v198_v7 = vpack.c.bf16 %v196_v5, %v196_v5 }
  0xd2   :  { %v268_v9 = vunpack.c.l.b16 %v198_v7 }
  0xd4   :  { %v270_v10 = vsel %vm269_vm2, %v268_v9, %v267_v8 }
  0xd5   :  { %v271_v11 = vpack.c.b16 %v270_v10, %v270_v10 }
  0xd7   :  { %329 = vmatmul.bf16.vlgmr.msra.gmra.mxu3 %v271_v11 }
 0x15a   :  { %v330_v15 = vpop.f32.mrf.mxu3 }
 0x15b   :  { %v331_v16 = vadd.f32 %v330_v15, %v261_v12 }
 0x15d   :  { %v338_v17 = vadd.f32 %v491_v14, %v331_v16 }
 0x15f   :  { %339 = vst [vmem:[#allocation2] sm:$0x3] %v338_v17 }
 0x160   :  { %350 = dma.vmem_to_hbm [thread:$0]  %s346_s15, 32, %s348_s18, [#allocation3]  }
 0x162   :  { %v332_v18 = vpop.f32.mrf.mxu3 }
 0x163   :  { %524 = dma.done.wait [#allocation3], 32  }
 0x164   :  { %525 = vsyncadd [#allocation3], 4294967264 }
 0x165   :  { %355 = vsyncpa [#allocation3], 1 }

</bundles_post_ra>
